<compile_context>
chip_gen: v6e
topology: v6e:2x2x1
jax: 0.10.0
libtpu: 0.0.40
codegen_flags: <defaults>
</compile_context>

<pallas_src>
import functools
import math

import jax
import jax.numpy as jnp
from jax.experimental import pallas as pl
from jax.experimental.pallas import tpu as pltpu


def _round_up(x, m):
    return ((x + m - 1) // m) * m


def _pick_divisor_tile(total, target, step=128):
    """Largest multiple of `step` <= target that divides `total` (total % step == 0)."""
    t = max((min(target, total) // step) * step, step)
    while total % t != 0:
        t -= step
    return t


def _vmem_capacity_bytes():
    try:
        return int(pltpu.get_tpu_info().vmem_capacity_bytes)
    except Exception:
        return 64 * 1024 * 1024  # conservative fallback (v7x per-TC)


# ---------------------------------------------------------------------------
# Kernels
# ---------------------------------------------------------------------------
def _ffn_resident_kernel(x_ref, w1_ref, b1_ref, w2_ref, b2_ref, o_ref, *, tf):
    """Weights fully VMEM-resident; 1-D grid over M; loop d_ff chunks in-kernel."""
    n_f = w1_ref.shape[1] // tf

    # Initialize the output tile with the second bias; accumulate chunks into it.
    o_ref[...] = jnp.broadcast_to(b2_ref[...], o_ref.shape).astype(o_ref.dtype)

    def body(f, carry):
        off = pl.multiple_of(f * tf, 128)
        h = jnp.dot(x_ref[...], w1_ref[:, pl.ds(off, tf)],
                    preferred_element_type=jnp.float32)
        h = jnp.maximum(h + b1_ref[:, pl.ds(off, tf)], 0.0)  # bias + ReLU in f32
        o_ref[...] += jnp.dot(h.astype(w2_ref.dtype), w2_ref[pl.ds(off, tf), :],
                              preferred_element_type=jnp.float32)
        return carry

    jax.lax.fori_loop(0, n_f, body, 0, unroll=(n_f <= 8))


def _ffn_stream_kernel(x_ref, w1_ref, b1_ref, w2_ref, b2_ref, o_ref):
    """Streaming fallback: grid = (M tiles, d_ff tiles); accumulate into o_ref."""
    f = pl.program_id(1)

    @pl.when(f == 0)
    def _():
        o_ref[...] = jnp.broadcast_to(b2_ref[...], o_ref.shape).astype(o_ref.dtype)

    h = jnp.dot(x_ref[...], w1_ref[...], preferred_element_type=jnp.float32)
    h = jnp.maximum(h + b1_ref[...], 0.0)
    o_ref[...] += jnp.dot(h.astype(w2_ref.dtype), w2_ref[...],
                          preferred_element_type=jnp.float32)


# ---------------------------------------------------------------------------
# Parameter preparation (pad + cast ONCE, outside the hot path)
# ---------------------------------------------------------------------------
def prepare_ffn_params(w1, b1, w2, b2, *, weight_dtype=jnp.bfloat16):
    d_model, d_ff = w1.shape
    Dp = _round_up(d_model, 128)   # lane-dense output / contraction dims
    Fp = _round_up(d_ff, 128)
    w1p = jnp.pad(w1, ((0, Dp - d_model), (0, Fp - d_ff))).astype(weight_dtype)
    b1p = jnp.pad(b1, (0, Fp - d_ff)).reshape(1, Fp).astype(jnp.float32)
    w2p = jnp.pad(w2, ((0, Fp - d_ff), (0, Dp - d_model))).astype(weight_dtype)
    b2p = jnp.pad(b2, (0, Dp - d_model)).reshape(1, Dp).astype(jnp.float32)
    return dict(w1=w1p, b1=b1p, w2=w2p, b2=b2p, d_model=d_model, d_ff=d_ff)


# ---------------------------------------------------------------------------
# Wrapper
# ---------------------------------------------------------------------------
def apply_feed_forward(x, params, *, block_m=None, block_f=None,
                       x_dtype=jnp.bfloat16):
    d_model, d_ff = params["d_model"], params["d_ff"]
    w1p, b1p, w2p, b2p = params["w1"], params["b1"], params["w2"], params["b2"]
    Dp, Fp = w1p.shape

    lead = x.shape[:-1]
    x2 = x.reshape(-1, x.shape[-1])
    M = x2.shape[0]

    vmem_cap = _vmem_capacity_bytes()
    budget = int(vmem_cap * 0.75)          # tile budget (leave compiler headroom)
    vmem_limit = int(vmem_cap * 0.85)      # never the full physical VMEM

    # Per-generation default M tile: 1024 on 128-MiB parts (v5e/v6e), 512 on v7x.
    if block_m is None:
        block_m = 1024 if vmem_cap >= 100 * 1024 * 1024 else 512
    tm = min(block_m, _round_up(M, 8))

    if block_f is None:
        block_f = 512
    tf = _pick_divisor_tile(Fp, block_f)   # divides Fp -> no ragged weight tiles

    wsz = jnp.dtype(w1p.dtype).itemsize
    xsz = jnp.dtype(x_dtype).itemsize
    weight_bytes = 2 * Dp * Fp * wsz + (Fp + Dp) * 4

    def stream_bytes(tm_, tf_):
        return (2 * tm_ * Dp * xsz             # x (double-buffered)
                + 2 * (2 * Dp * tf_) * wsz     # w1 + w2 panels
                + 2 * tm_ * Dp * 4             # out (f32)
                + 4 * (tf_ + Dp) * 4)          # biases

    def resident_bytes(tm_):
        # Conservative: assume weights still get 2 pipeline buffers.
        return 2 * weight_bytes + 2 * tm_ * Dp * xsz + 2 * tm_ * Dp * 4

    resident = resident_bytes(tm) <= budget
    if not resident:
        while tm > 8 and stream_bytes(tm, tf) > budget:
            tm = max(8, _round_up(tm // 2, 8))
        while tf > 128 and stream_bytes(tm, tf) > budget:
            tf = _pick_divisor_tile(Fp, tf - 128)

    Mp = _round_up(M, tm)
    xp = jnp.pad(x2, ((0, Mp - M), (0, Dp - x2.shape[-1]))).astype(x_dtype)

    cost = pl.CostEstimate(
        flops=4 * M * d_ff * d_model,
        transcendentals=0,
        bytes_accessed=int(M * d_model * xsz + weight_bytes + M * d_model * 4),
    )

    if resident:
        grid = (Mp // tm,)
        out = pl.pallas_call(
            functools.partial(_ffn_resident_kernel, tf=tf),
            out_shape=jax.ShapeDtypeStruct((Mp, Dp), jnp.float32),
            grid_spec=pltpu.PrefetchScalarGridSpec(
                num_scalar_prefetch=0,
                grid=grid,
                in_specs=[
                    pl.BlockSpec((tm, Dp), lambda i: (i, 0)),   # x tile
                    pl.BlockSpec((Dp, Fp), lambda i: (0, 0)),   # w1 (DMA'd once)
                    pl.BlockSpec((1, Fp), lambda i: (0, 0)),    # b1
                    pl.BlockSpec((Fp, Dp), lambda i: (0, 0)),   # w2 (DMA'd once)
                    pl.BlockSpec((1, Dp), lambda i: (0, 0)),    # b2
                ],
                out_specs=pl.BlockSpec((tm, Dp), lambda i: (i, 0)),
            ),
            compiler_params=pltpu.CompilerParams(
                dimension_semantics=("parallel",),
                vmem_limit_bytes=vmem_limit,
            ),
            cost_estimate=cost,
        )(xp, w1p, b1p, w2p, b2p)
    else:
        grid = (Mp // tm, Fp // tf)
        out = pl.pallas_call(
            _ffn_stream_kernel,
            out_shape=jax.ShapeDtypeStruct((Mp, Dp), jnp.float32),
            grid_spec=pltpu.PrefetchScalarGridSpec(
                num_scalar_prefetch=0,
                grid=grid,
                in_specs=[
                    pl.BlockSpec((tm, Dp), lambda i, f: (i, 0)),  # x tile
                    pl.BlockSpec((Dp, tf), lambda i, f: (0, f)),  # w1 panel
                    pl.BlockSpec((1, tf), lambda i, f: (0, f)),   # b1 chunk
                    pl.BlockSpec((tf, Dp), lambda i, f: (f, 0)),  # w2 panel
                    pl.BlockSpec((1, Dp), lambda i, f: (0, 0)),   # b2
                ],
                out_specs=pl.BlockSpec((tm, Dp), lambda i, f: (i, 0)),
            ),
            compiler_params=pltpu.CompilerParams(
                dimension_semantics=("parallel", "arbitrary"),
                vmem_limit_bytes=vmem_limit,
            ),
            cost_estimate=cost,
        )(xp, w1p, b1p, w2p, b2p)

    return out[:M, :d_model].reshape(*lead, d_model)


def feed_forward(x, w1, b1, w2, b2, **kwargs):
    """Fused y = relu(x @ w1 + b1) @ w2 + b2 (dropout == identity in eval)."""
    return apply_feed_forward(x, prepare_ffn_params(w1, b1, w2, b2), **kwargs)


# ---------------------------------------------------------------------------
# Reference + deterministic init (matches torch nn.Linear init scheme)
# ---------------------------------------------------------------------------
def init_linear(key, d_in, d_out):
    kw, kb = jax.random.split(key)
    bound = 1.0 / math.sqrt(d_in)
    w = jax.random.uniform(kw, (d_in, d_out), jnp.float32, -bound, bound)
    b = jax.random.uniform(kb, (d_out,), jnp.float32, -bound, bound)
    return w, b


def feed_forward_ref(x, w1, b1, w2, b2):
    h = jnp.maximum(x @ w1 + b1, 0.0)
    return h @ w2 + b2


# ---------------------------------------------------------------------------
if __name__ == "__main__":
    B, S, D_MODEL, D_FF = 2, 8, 32, 64

    root = jax.random.PRNGKey(0)
    k1, k2, kx = jax.random.split(root, 3)

    w1, b1 = init_linear(k1, D_MODEL, D_FF)
    w2, b2 = init_linear(k2, D_FF, D_MODEL)
    x = jax.random.normal(kx, (B, S, D_MODEL), jnp.float32)

    out = feed_forward(x, w1, b1, w2, b2)
    out = jax.block_until_ready(out)

    assert out.shape == (B, S, D_MODEL), out.shape
    assert jnp.all(jnp.isfinite(out))

    # Loose tolerance: bf16 matmul inputs, f32 accumulation.
    ref = feed_forward_ref(x, w1, b1, w2, b2)
    assert jnp.allclose(out, ref, rtol=5e-2, atol=5e-2), (
        float(jnp.max(jnp.abs(out - ref))))

    print("KERNEL_OK")
</pallas_src>

<mosaic_0001>
module attributes {stable_mosaic.version = 11 : i64} {
  func.func @_ffn_resident_kernel(%arg0: i32, %arg1: memref<16x128xbf16, #tpu.memory_space<vmem>>, %arg2: memref<128x128xbf16, #tpu.memory_space<vmem>>, %arg3: memref<1x128xf32, #tpu.memory_space<vmem>>, %arg4: memref<128x128xbf16, #tpu.memory_space<vmem>>, %arg5: memref<1x128xf32, #tpu.memory_space<vmem>>, %arg6: memref<16x128xf32, #tpu.memory_space<vmem>>) attributes {dimension_semantics = [#tpu.dimension_semantics<parallel>], iteration_bounds = array<i64: 1>, scalar_prefetch = 0 : i64, scratch_operands = 0 : i64, tpu.core_type = #tpu.core_type<tc>, window_params = [{transform_indices = @transform_0, window_bounds = array<i64: 16, 128>}, {pipeline_mode = #tpu.pipeline_mode<synchronous>, transform_indices = @transform_1, window_bounds = array<i64: 128, 128>}, {pipeline_mode = #tpu.pipeline_mode<synchronous>, transform_indices = @transform_2, window_bounds = array<i64: 1, 128>}, {pipeline_mode = #tpu.pipeline_mode<synchronous>, transform_indices = @transform_3, window_bounds = array<i64: 128, 128>}, {pipeline_mode = #tpu.pipeline_mode<synchronous>, transform_indices = @transform_4, window_bounds = array<i64: 1, 128>}, {transform_indices = @transform_5, window_bounds = array<i64: 16, 128>}]} {
    %c0 = arith.constant 0 : index
    %c0_0 = arith.constant 0 : index
    %0 = vector.load %arg5[%c0, %c0_0] : memref<1x128xf32, #tpu.memory_space<vmem>>, vector<1x128xf32>
    %1 = vector.shape_cast %0 : vector<1x128xf32> to vector<1x128xf32>
    %2 = vector.broadcast %1 : vector<1x128xf32> to vector<16x128xf32>
    %c0_1 = arith.constant 0 : index
    %c0_2 = arith.constant 0 : index
    %3 = vector.load %arg6[%c0_1, %c0_2] : memref<16x128xf32, #tpu.memory_space<vmem>>, vector<16x128xf32>
    tpu.vector_store %arg6[%c0_1, %c0_2], %2 {strides = array<i32>} : memref<16x128xf32, #tpu.memory_space<vmem>>, vector<16x128xf32>,
    %c0_i32 = arith.constant 0 : i32
    %c128_i32 = arith.constant 128 : i32
    %4 = arith.muli %c0_i32, %c128_i32 : i32
    %5 = tpu.assume_multiple %4, 128 : i32
    %c0_3 = arith.constant 0 : index
    %c0_4 = arith.constant 0 : index
    %6 = vector.load %arg1[%c0_3, %c0_4] : memref<16x128xbf16, #tpu.memory_space<vmem>>, vector<16x128xbf16>
    %c0_5 = arith.constant 0 : index
    %7 = arith.index_cast %5 : i32 to index
    %8 = vector.load %arg2[%c0_5, %7] : memref<128x128xbf16, #tpu.memory_space<vmem>>, vector<128x128xbf16>
    %cst = arith.constant dense<0.000000e+00> : vector<16x128xf32>
    %9 = tpu.matmul %6, %8, %cst {dimension_numbers = #tpu.dot_dimension_numbers<[1], [0], [0], [1], [0, 0, 1, 1], [], []>} : vector<16x128xbf16>, vector<128x128xbf16>, vector<16x128xf32> -> vector<16x128xf32>
    %c0_6 = arith.constant 0 : index
    %10 = arith.index_cast %5 : i32 to index
    %11 = vector.load %arg3[%c0_6, %10] : memref<1x128xf32, #tpu.memory_space<vmem>>, vector<1x128xf32>
    %12 = vector.broadcast %11 : vector<1x128xf32> to vector<16x128xf32>
    %13 = arith.addf %9, %12 : vector<16x128xf32>
    %cst_7 = arith.constant 0.000000e+00 : f32
    %14 = vector.broadcast %cst_7 : f32 to vector<16x128xf32>
    %15 = arith.maximumf %13, %14 : vector<16x128xf32>
    %c0_8 = arith.constant 0 : index
    %c0_9 = arith.constant 0 : index
    %16 = vector.load %arg6[%c0_8, %c0_9] : memref<16x128xf32, #tpu.memory_space<vmem>>, vector<16x128xf32>
    %17 = arith.truncf %15 : vector<16x128xf32> to vector<16x128xbf16>
    %18 = arith.index_cast %5 : i32 to index
    %c0_10 = arith.constant 0 : index
    %19 = vector.load %arg4[%18, %c0_10] : memref<128x128xbf16, #tpu.memory_space<vmem>>, vector<128x128xbf16>
    %cst_11 = arith.constant dense<0.000000e+00> : vector<16x128xf32>
    %20 = tpu.matmul %17, %19, %cst_11 {dimension_numbers = #tpu.dot_dimension_numbers<[1], [0], [0], [1], [0, 0, 1, 1], [], []>} : vector<16x128xbf16>, vector<128x128xbf16>, vector<16x128xf32> -> vector<16x128xf32>
    %21 = arith.addf %16, %20 : vector<16x128xf32>
    %c0_12 = arith.constant 0 : index
    %c0_13 = arith.constant 0 : index
    %22 = vector.load %arg6[%c0_12, %c0_13] : memref<16x128xf32, #tpu.memory_space<vmem>>, vector<16x128xf32>
    tpu.vector_store %arg6[%c0_12, %c0_13], %21 {strides = array<i32>} : memref<16x128xf32, #tpu.memory_space<vmem>>, vector<16x128xf32>,
    %c1_i32 = arith.constant 1 : i32
    return
  }
  func.func @transform_0(%arg0: i32) -> (i32, i32) {
    %c0_i32 = arith.constant 0 : i32
    %c0_i32_0 = arith.constant 0 : i32
    return %arg0, %c0_i32 : i32, i32
  }
  func.func @transform_1(%arg0: i32) -> (i32, i32) {
    %c0_i32 = arith.constant 0 : i32
    %c0_i32_0 = arith.constant 0 : i32
    %c0_i32_1 = arith.constant 0 : i32
    return %c0_i32, %c0_i32_0 : i32, i32
  }
  func.func @transform_2(%arg0: i32) -> (i32, i32) {
    %c0_i32 = arith.constant 0 : i32
    %c0_i32_0 = arith.constant 0 : i32
    %c0_i32_1 = arith.constant 0 : i32
    return %c0_i32, %c0_i32_0 : i32, i32
  }
  func.func @transform_3(%arg0: i32) -> (i32, i32) {
    %c0_i32 = arith.constant 0 : i32
    %c0_i32_0 = arith.constant 0 : i32
    %c0_i32_1 = arith.constant 0 : i32
    return %c0_i32, %c0_i32_0 : i32, i32
  }
  func.func @transform_4(%arg0: i32) -> (i32, i32) {
    %c0_i32 = arith.constant 0 : i32
    %c0_i32_0 = arith.constant 0 : i32
    %c0_i32_1 = arith.constant 0 : i32
    return %c0_i32, %c0_i32_0 : i32, i32
  }
  func.func @transform_5(%arg0: i32) -> (i32, i32) {
    %c0_i32 = arith.constant 0 : i32
    %c0_i32_0 = arith.constant 0 : i32
    return %arg0, %c0_i32 : i32, i32
  }
}

</mosaic_0001>

<bundles_post_ra>
// kernel: tpu_custom_call.1
= control target key start
LH: loop header
LB: loop body
LE: loop exit
PB: predicated region body
PF: predicated region fallthrough
CT: control target
= control target key end

     0   :  { %10 = vsyncpa [#allocation3], 0  ;;  %s572_s0 = inlined_call_operand.hbm [shape: bf16[16,128], index: 0, kind: input, shape index: {}]   ;;  %s573_s1 = inlined_call_operand.hbm [shape: bf16[128,128], index: 1, kind: input, shape index: {}]   ;;  %s574_s2 = inlined_call_operand.vmem [shape: f32[1,128], index: 2, kind: input, shape index: {}]   ;;  %s575_s3 = inlined_call_operand.hbm [shape: bf16[128,128], index: 3, kind: input, shape index: {}]   ;;  %s576_s4 = inlined_call_operand.vmem [shape: f32[1,128], index: 4, kind: input, shape index: {}]   ;;  %s577_s5 = inlined_call_operand.hbm [shape: f32[16,128], index: 5, kind: output, shape index: {}]  }
   0x1   :  { %11 = vsyncpa [#allocation6], 0 }
   0x2   :  { %12 = vsyncpa [#allocation4], 0  ;;  %s514_s18 = smov [#allocation5]   ;;  %s515_s20 = smov [#allocation2]  }
   0x3   :  { %s30_s19 = sshll.u32 %s514_s18, 4  ;;  %s18_s21 = sshll.u32 %s515_s20, 4  ;;  %s31_s19 = int_to_ptr.vmem [resolvable:$true] %s30_s19  ;;  %s19_s21 = int_to_ptr.vmem [resolvable:$true] %s18_s21 }
   0x4   :  { %s436_s22 = scalar_lea.vmem %s31_s19, 1024  ;;  %p441_p1 = scmp.lt.s32.totalorder %s31_s19, %s31_s19 }
   0x5   :  { %p437_p0 = scmp.ne.s32.totalorder %s31_s19, %s436_s22  ;;  %p442_p2 = scmp.lt.s32.totalorder %s436_s22, %s436_s22 }
   0x7   :  { %p443_p3 = por %p442_p2, %p441_p1 }
   0x9   :  { %p444_p4 = pnand %p443_p3, %p437_p0 }
   0xb   :  { %447 = shalt.err (!%p444_p4)
}
   0xc   :  { %s516_s23 = smov 64   ;;  %s517_s24 = smov 4  }
   0xd   :  { %36 = dma.hbm_to_vmem [thread:$0]  %s573_s1, 1024, %s31_s19, [#allocation6], %s516_s23, %s516_s23, %s517_s24  }
   0xe   :  { %s456_s27 = scalar_lea.vmem %s19_s21, 128  ;;  %p461_p6 = scmp.lt.s32.totalorder %s19_s21, %s19_s21 }
   0xf   :  { %p457_p5 = scmp.ne.s32.totalorder %s19_s21, %s456_s27  ;;  %p462_p7 = scmp.lt.s32.totalorder %s456_s27, %s456_s27 }
  0x11   :  { %p463_p8 = por %p462_p7, %p461_p6 }
  0x13   :  { %p464_p9 = pnand %p463_p8, %p457_p5 }
  0x15   :  { %467 = shalt.err (!%p464_p9)
}
  0x16   :  { %24 = dma.hbm_to_vmem [thread:$0]  %s572_s0, 128, %s19_s21, [#allocation3], %s516_s23, %s516_s23, %s517_s24  }
  0x17   :  { %s518_s30 = smov [#allocation7]  }
  0x18   :  { %s44_s6 = sshll.u32 %s518_s30, 4  ;;  %s45_s6 = int_to_ptr.vmem [resolvable:$true] %s44_s6 }
  0x19   :  { %s476_s7 = scalar_lea.vmem %s45_s6, 1024  ;;  %p481_p11 = scmp.lt.s32.totalorder %s45_s6, %s45_s6 }
  0x1a   :  { %p477_p10 = scmp.ne.s32.totalorder %s45_s6, %s476_s7  ;;  %p482_p12 = scmp.lt.s32.totalorder %s476_s7, %s476_s7 }
  0x1c   :  { %p483_p13 = por %p482_p12, %p481_p11 }
  0x1e   :  { %p484_p0 = pnand %p483_p13, %p477_p10 }
  0x20   :  { %487 = shalt.err (!%p484_p0)
}
  0x21   :  { %50 = dma.hbm_to_vmem [thread:$0]  %s575_s3, 1024, %s45_s6, [#allocation6], %s516_s23, %s516_s23, %s517_s24  }
  0x22   :  { %508 = dma.done.wait [#allocation3], 128  }
  0x23   :  { %509 = vsyncadd [#allocation3], 4294967168 }
  0x24   :  { %510 = dma.done.wait [#allocation6], 2048  }
  0x25   :  { %511 = vsyncadd [#allocation6], 4294965248  ;;  %v519_v0 = vmov 0.0   ;;  %vm520_vm0 = vmmov 0   ;;  %v411_v1 = vld [vmem:[#allocation5 + $0x38] sm:$0xff]   ;;  %v412_v2 = vld [vmem:[#allocation5 + $0x30] sm:$0xff]  }
  0x26   :  { %361 = vmatprep.subr.bf16.mxu0 %v519_v0  ;;  %377 = vmatprep.mubr.msk.bf16.mxu0 %vm520_vm0, %v519_v0  ;;  %v413_v3 = vld [vmem:[#allocation5 + $0x28] sm:$0xff]   ;;  %v420_v4 = vld [vmem:[#allocation7 + $0x38] sm:$0xff]   ;;  %v414_v5 = vld [vmem:[#allocation5 + $0x20] sm:$0xff]   ;;  %s521_s11 = smov [#allocation8]  }
  0x27   :  { %381 = vmatprep.subr.bf16.mxu1 %v519_v0  ;;  %397 = vmatprep.mubr.msk.bf16.mxu1 %vm520_vm0, %v519_v0  ;;  %v421_v6 = vld [vmem:[#allocation7 + $0x30] sm:$0xff]   ;;  %v415_v7 = vld [vmem:[#allocation5 + $0x18] sm:$0xff]   ;;  %v422_v8 = vld [vmem:[#allocation7 + $0x28] sm:$0xff]   ;;  %s311_s12 = sshll.u32 %s521_s11, 4  ;;  %s312_s12 = int_to_ptr.vmem [resolvable:$true] %s311_s12 }
  0x28   :  { %362 = vmatpush3.bf16.msra.mxu0 %v411_v1  ;;  %382 = vmatpush3.bf16.msra.mxu1 %v420_v4  ;;  %v416_v9 = vld [vmem:[#allocation5 + $0x10] sm:$0xff]   ;;  %v423_v10 = vld [vmem:[#allocation7 + $0x20] sm:$0xff]   ;;  %v417_v11 = vld [vmem:[#allocation5 + $0x8] sm:$0xff]   ;;  %p493_p2 = scmp.lt.s32.totalorder %s312_s12, %s312_s12 }
  0x29   :  { %363 = vmatprep.subr.bf16.mxu0 %v519_v0  ;;  %383 = vmatprep.subr.bf16.mxu1 %v519_v0  ;;  %v424_v12 = vld [vmem:[#allocation7 + $0x18] sm:$0xff]   ;;  %v418_v13 = vld [vmem:[#allocation5] sm:$0xff]   ;;  %v425_v15 = vld [vmem:[#allocation7 + $0x10] sm:$0xff]  }
  0x2a   :  { %v419_v14 = vld [vmem:[#allocation2] sm:$0xff]   ;;  %v426_v16 = vld [vmem:[#allocation7 + $0x8] sm:$0xff]   ;;  %v427_v17 = vld [vmem:[#allocation7] sm:$0xff]  }
  0x2b   :  { %v325_v18 = vld [vmem:[%s574_s2] ss:$0 sm:$0xff]  ;;  %s488_s2 = scalar_lea.vmem %s312_s12, 256 }
  0x2c   :  { %364 = vmatpush3.bf16.msra.mxu0 %v412_v2  ;;  %384 = vmatpush3.bf16.msra.mxu1 %v421_v6  ;;  %v324_v28 = vld [vmem:[%s576_s4] ss:$0 sm:$0xff]  ;;  %p489_p1 = scmp.ne.s32.totalorder %s312_s12, %s488_s2  ;;  %p494_p3 = scmp.lt.s32.totalorder %s488_s2, %s488_s2 }
  0x2d   :  { %365 = vmatprep.subr.bf16.mxu0 %v519_v0  ;;  %385 = vmatprep.subr.bf16.mxu1 %v519_v0 }
  0x2e   :  { %p495_p4 = por %p494_p3, %p493_p2 }
  0x30   :  { %366 = vmatpush3.bf16.msra.mxu0 %v413_v3  ;;  %386 = vmatpush3.bf16.msra.mxu1 %v422_v8  ;;  %p496_p5 = pnand %p495_p4, %p489_p1 }
  0x31   :  { %367 = vmatprep.subr.bf16.mxu0 %v519_v0  ;;  %387 = vmatprep.subr.bf16.mxu1 %v519_v0 }
  0x34   :  { %368 = vmatpush3.bf16.msra.mxu0 %v414_v5  ;;  %388 = vmatpush3.bf16.msra.mxu1 %v423_v10 }
  0x35   :  { %369 = vmatprep.subr.bf16.mxu0 %v519_v0  ;;  %389 = vmatprep.subr.bf16.mxu1 %v519_v0 }
  0x38   :  { %370 = vmatpush3.bf16.msra.mxu0 %v415_v7  ;;  %390 = vmatpush3.bf16.msra.mxu1 %v424_v12 }
  0x39   :  { %371 = vmatprep.subr.bf16.mxu0 %v519_v0  ;;  %391 = vmatprep.subr.bf16.mxu1 %v519_v0 }
  0x3c   :  { %372 = vmatpush3.bf16.msra.mxu0 %v416_v9  ;;  %392 = vmatpush3.bf16.msra.mxu1 %v425_v15 }
  0x3d   :  { %373 = vmatprep.subr.bf16.mxu0 %v519_v0  ;;  %393 = vmatprep.subr.bf16.mxu1 %v519_v0 }
  0x40   :  { %374 = vmatpush3.bf16.msra.mxu0 %v417_v11  ;;  %394 = vmatpush3.bf16.msra.mxu1 %v426_v16 }
  0x41   :  { %375 = vmatprep.subr.bf16.mxu0 %v519_v0  ;;  %395 = vmatprep.subr.bf16.mxu1 %v519_v0 }
  0x44   :  { %376 = vmatpush3.bf16.msra.mxu0 %v418_v13  ;;  %396 = vmatpush3.bf16.msra.mxu1 %v427_v17 }
  0x47   :  { %378 = vmatmul.mubr.bf16.vlgmr.msra.gmra.mxu0 %v419_v14 }
 0x107   :  { %v185_v19 = vpop.f32.mrf.mxu0 }
 0x108   :  { %v186_v21 = vadd.f32 %v325_v18, %v185_v19 }
 0x109   :  { %v379_v20 = vpop.f32.mrf.mxu0 }
 0x10a   :  { %v192_v25 = vmax.f32 %v186_v21, 0.0 }
 0x10b   :  { %v188_v22 = vpop.f32.mrf.mxu0 }
 0x10c   :  { %v189_v23 = vadd.f32 %v325_v18, %v188_v22 }
 0x10d   :  { %v380_v24 = vpop.f32.mrf.mxu0 }
 0x10e   :  { %v193_v26 = vmax.f32 %v189_v23, 0.0 }
 0x110   :  { %v196_v27 = vpack.c.bf16 %v193_v26, %v192_v25 }
 0x112   :  { %398 = vmatmul.mubr.bf16.vlgmr.msra.gmra.mxu1 %v196_v27 }
 0x1d2   :  { %v295_v29 = vpop.f32.mrf.mxu1 }
 0x1d3   :  { %v302_v30 = vadd.f32 %v324_v28, %v295_v29 }
 0x1d4   :  { %v399_v31 = vpop.f32.mrf.mxu1 }
 0x1d5   :  { %304 = vst [vmem:[#allocation8] sm:$0xff] %v302_v30 }
 0x1d6   :  { %v298_v32 = vpop.f32.mrf.mxu1 }
 0x1d7   :  { %v303_v33 = vadd.f32 %v324_v28, %v298_v32 }
 0x1d8   :  { %v400_v34 = vpop.f32.mrf.mxu1 }
 0x1d9   :  { %305 = vst [vmem:[#allocation8 + $0x8] sm:$0xff] %v303_v33 }
 0x1da   :  { %499 = shalt.err (!%p496_p5)
}
 0x1db   :  { %s522_s13 = smov 128   ;;  %s523_s4 = smov 8  }
 0x1dc   :  { %317 = dma.vmem_to_hbm [thread:$0]  %s312_s12, 256, %s577_s5, [#allocation4], %s522_s13, %s522_s13, %s523_s4  }
 0x1dd   :  { %512 = dma.done.wait [#allocation4], 256  }
 0x1de   :  { %513 = vsyncadd [#allocation4], 4294967040 }
 0x1df   :  { %321 = vsyncpa [#allocation3], 1 }
 0x1e0   :  { %322 = vsyncpa [#allocation6], 1 }
 0x1e1   :  { %323 = vsyncpa [#allocation4], 1 }

</bundles_post_ra>
